<compile_context>
chip_gen: v6e
topology: v6e:2x2x1
jax: 0.10.0
libtpu: 0.0.40
codegen_flags: <defaults>
</compile_context>

<pallas_src>
import jax
import jax.numpy as jnp
from jax.experimental import pallas as pl
from jax.experimental.pallas import tpu as pltpu


# ---------------------------------------------------------------------------
# Kernels. Activation refs are (F, TILE_N) with N on the lane axis; weights are
# (Mout, F); bias is (Mout, 1) f32; output is (Mout, TILE_N).
# ---------------------------------------------------------------------------
def _msg_kernel_fused(e_ref, h_ref, wA_ref, wB_ref, b_ref, out_ref):
    # Handles both 'concat' (zero-padded weights) and default 'sum' variants.
    acc = jnp.dot(wA_ref[...], e_ref[...], preferred_element_type=jnp.float32)
    acc = acc + jnp.dot(wB_ref[...], h_ref[...], preferred_element_type=jnp.float32)
    acc = acc + b_ref[...]
    out_ref[...] = jnp.maximum(acc, 0.0).astype(out_ref.dtype)  # single full-width store


def _msg_kernel_edge(e_ref, w0_ref, b0_ref, out_ref):
    acc = jnp.dot(w0_ref[...], e_ref[...], preferred_element_type=jnp.float32)
    out_ref[...] = jnp.maximum(acc + b0_ref[...], 0.0).astype(out_ref.dtype)


# ---------------------------------------------------------------------------
# Tiling choice.
# ---------------------------------------------------------------------------
def _pick_tile_n(n, b):
    """128-aligned N tile, capped at 2048; ensure >=2 grid steps when possible."""
    if n <= 128:
        tn = n                      # full-extent block (allowed even if < 128)
    else:
        tn = 128
        while tn * 2 <= min(n, 2048):
            tn *= 2
    # Make sure v7x's second TensorCore has work: >=2 steps on a "parallel" axis.
    while b * pl.cdiv(n, tn) < 2 and tn % 256 == 0:
        tn //= 2
    return tn


def message_function_forward(h_v, h_w, e_vw, params, *, message_def, out_dtype=None):
    """JAX/Pallas equivalent of MessageFunction.forward.

    h_v is accepted (like the PyTorch module) but unused by the forward pass.
    params = (w0, b0, w1, b1) in torch.nn.Linear layout:
      w0: (M, edge_feat), b0: (M,), w1: (M, node_feat), b1: (M,),
      M = message_size // 2 if 'concat' in message_def else message_size.
    Inputs stay in the PyTorch (B, feature, node) layout end-to-end; activations
    are consumed in the caller's dtype (f32 or bf16), accumulation is f32.
    """
    del h_v  # unused in the reference forward
    message_def = message_def.lower()
    concat = 'concat' in message_def
    edge = 'edge' in message_def

    B, Fe, N = e_vw.shape
    _, Fn, _ = h_w.shape
    w0, b0, w1, b1 = params
    M = w0.shape[0]
    msg_size = 2 * M if concat else M

    act_dtype = e_vw.dtype
    if out_dtype is None:
        out_dtype = act_dtype
    # Weights match the activation dtype (bf16-native MXU path when acts are bf16),
    # bias stays f32 and is added to the f32 accumulator.
    w_dtype = jnp.bfloat16 if act_dtype == jnp.bfloat16 else jnp.float32

    tn = _pick_tile_n(N, B)
    grid = (B, pl.cdiv(N, tn))

    def act_spec(feat):
        # (B, F, N) -> per-step block (F, tn); batch dim squeezed out.
        return pl.BlockSpec((None, feat, tn), lambda b, n: (b, 0, n))

    def const_spec(shape):
        # Weights / biases: resident in VMEM for the whole grid.
        return pl.BlockSpec(shape, lambda b, n: (0, 0))

    out_spec = pl.BlockSpec((None, msg_size, tn), lambda b, n: (b, 0, n))
    out_shape = jax.ShapeDtypeStruct((B, msg_size, N), out_dtype)
    cparams = pltpu.CompilerParams(dimension_semantics=("parallel", "parallel"))

    act_bytes = jnp.dtype(act_dtype).itemsize
    out_bytes = jnp.dtype(out_dtype).itemsize
    w_bytes = jnp.dtype(w_dtype).itemsize

    if edge and not concat:
        # Node linear is discarded by the reference forward -> skip its DMA + matmul.
        w0c = w0.astype(w_dtype)
        b0c = b0.reshape(M, 1).astype(jnp.float32)
        ce = pl.CostEstimate(
            flops=int(2 * B * N * M * Fe),
            transcendentals=0,
            bytes_accessed=int(B * Fe * N * act_bytes + M * Fe * w_bytes
                               + M * 4 + B * msg_size * N * out_bytes))
        return pl.pallas_call(
            _msg_kernel_edge,
            grid=grid,
            in_specs=[act_spec(Fe), const_spec((M, Fe)), const_spec((M, 1))],
            out_specs=out_spec,
            out_shape=out_shape,
            compiler_params=cparams,
            cost_estimate=ce,
        )(e_vw, w0c, b0c)

    if concat:
        # Fold the concat into zero-padded weights: one accumulate, one store,
        # numerically identical (padded rows contribute exact zeros).
        wA = jnp.concatenate([w0, jnp.zeros((M, Fe), w0.dtype)], axis=0).astype(w_dtype)
        wB = jnp.concatenate([jnp.zeros((M, Fn), w1.dtype), w1], axis=0).astype(w_dtype)
        bc = jnp.concatenate([b0, b1], axis=0).reshape(msg_size, 1).astype(jnp.float32)
    else:
        # 'sum' variant: pre-add the two biases -> one resident bias operand.
        wA = w0.astype(w_dtype)
        wB = w1.astype(w_dtype)
        bc = (b0 + b1).reshape(msg_size, 1).astype(jnp.float32)

    ce = pl.CostEstimate(
        flops=int(2 * B * N * msg_size * (Fe + Fn)),
        transcendentals=0,
        bytes_accessed=int(B * (Fe + Fn) * N * act_bytes
                           + (wA.size + wB.size) * w_bytes + msg_size * 4
                           + B * msg_size * N * out_bytes))

    return pl.pallas_call(
        _msg_kernel_fused,
        grid=grid,
        in_specs=[act_spec(Fe), act_spec(Fn),
                  const_spec((msg_size, Fe)), const_spec((msg_size, Fn)),
                  const_spec((msg_size, 1))],
        out_specs=out_spec,
        out_shape=out_shape,
        compiler_params=cparams,
        cost_estimate=ce,
    )(e_vw, h_w, wA, wB, bc)


# ---------------------------------------------------------------------------
# Pure-JAX reference mirroring the PyTorch per-node loop (vectorized, f32 math).
# ---------------------------------------------------------------------------
def _reference_forward(h_w, e_vw, params, *, message_def):
    message_def = message_def.lower()
    concat = 'concat' in message_def
    edge = 'edge' in message_def
    w0, b0, w1, b1 = params
    e = jnp.transpose(e_vw.astype(jnp.float32), (0, 2, 1))  # (B, N, Fe)
    h = jnp.transpose(h_w.astype(jnp.float32), (0, 2, 1))   # (B, N, Fn)
    edge_out = e @ w0.T + b0
    node_out = h @ w1.T + b1
    if concat:
        msg = jnp.concatenate([edge_out, node_out], axis=-1)
    else:
        msg = edge_out if edge else edge_out + node_out
    msg = jnp.maximum(msg, 0.0)           # ReLU always applied (see note above)
    return jnp.transpose(msg, (0, 2, 1))  # (B, message_size, N)


def _make_params(key, Fe, Fn, M):
    k1, k2, k3, k4 = jax.random.split(key, 4)
    w0 = jax.random.uniform(k1, (M, Fe), jnp.float32, -1.0, 1.0) / jnp.sqrt(Fe)
    b0 = jax.random.uniform(k2, (M,), jnp.float32, -1.0, 1.0) / jnp.sqrt(Fe)
    w1 = jax.random.uniform(k3, (M, Fn), jnp.float32, -1.0, 1.0) / jnp.sqrt(Fn)
    b1 = jax.random.uniform(k4, (M,), jnp.float32, -1.0, 1.0) / jnp.sqrt(Fn)
    return (w0, b0, w1, b1)


if __name__ == "__main__":
    args = dict(edge_feature_size=6, node_feature_size=8, message_size=32)
    Fe = args['edge_feature_size']
    Fn = args['node_feature_size']
    msg_size = args['message_size']

    # (message_def, B, N, activation dtype):
    #   small concat case, tiled sum case, edge-only case that exercises the
    #   ">=2 grid steps" split (B=1), and a bf16 + non-128-divisible-N concat case
    #   that exercises the cdiv/partial-block path and bf16 I/O.
    configs = [
        ("linear_concat", 2, 8, jnp.float32),
        ("linear", 2, 512, jnp.float32),
        ("linear_edge", 1, 1024, jnp.float32),
        ("linear_concat", 2, 192, jnp.bfloat16),
    ]

    key = jax.random.PRNGKey(0)
    for message_def, B, N, act_dtype in configs:
        key, kp, k5, k6, k7 = jax.random.split(key, 5)
        concat = 'concat' in message_def
        M = msg_size // 2 if concat else msg_size
        params = _make_params(kp, Fe, Fn, M)

        # Inputs in PyTorch layout (B, feature, node)
        h_v = jax.random.normal(k5, (B, Fn, N), jnp.float32).astype(act_dtype)
        h_w = jax.random.normal(k6, (B, Fn, N), jnp.float32).astype(act_dtype)
        e_vw = jax.random.normal(k7, (B, Fe, N), jnp.float32).astype(act_dtype)

        out = message_function_forward(h_v, h_w, e_vw, params,
                                       message_def=message_def)
        out = jax.block_until_ready(out)

        ref = _reference_forward(h_w, e_vw, params, message_def=message_def)
        assert out.shape == (B, msg_size, N), (message_def, out.shape)
        assert out.dtype == act_dtype, (message_def, out.dtype)
        if act_dtype == jnp.float32:
            atol = rtol = 1e-4
        else:
            atol = rtol = 5e-2   # bf16 inputs/weights/output rounding
        assert jnp.allclose(out.astype(jnp.float32), ref, atol=atol, rtol=rtol), \
            f"mismatch vs reference for {message_def} (dtype={act_dtype})"

    print("KERNEL_OK")
</pallas_src>

<mosaic_0001>
module attributes {stable_mosaic.version = 11 : i64} {
  func.func @_msg_kernel_fused(%arg0: i32, %arg1: i32, %arg2: memref<1x6x8xf32, #tpu.memory_space<vmem>>, %arg3: memref<1x8x8xf32, #tpu.memory_space<vmem>>, %arg4: memref<32x6xf32, #tpu.memory_space<vmem>>, %arg5: memref<32x8xf32, #tpu.memory_space<vmem>>, %arg6: memref<32x1xf32, #tpu.memory_space<vmem>>, %arg7: memref<1x32x8xf32, #tpu.memory_space<vmem>>) attributes {dimension_semantics = [#tpu.dimension_semantics<parallel>, #tpu.dimension_semantics<parallel>], iteration_bounds = array<i64: 2, 1>, scalar_prefetch = 0 : i64, scratch_operands = 0 : i64, tpu.core_type = #tpu.core_type<tc>, window_params = [{transform_indices = @transform_0, window_bounds = array<i64: 1, 6, 8>}, {transform_indices = @transform_1, window_bounds = array<i64: 1, 8, 8>}, {pipeline_mode = #tpu.pipeline_mode<synchronous>, transform_indices = @transform_2, window_bounds = array<i64: 32, 6>}, {pipeline_mode = #tpu.pipeline_mode<synchronous>, transform_indices = @transform_3, window_bounds = array<i64: 32, 8>}, {pipeline_mode = #tpu.pipeline_mode<synchronous>, transform_indices = @transform_4, window_bounds = array<i64: 32, 1>}, {transform_indices = @transform_5, window_bounds = array<i64: 1, 32, 8>}]} {
    %c0 = arith.constant 0 : index
    %c0_0 = arith.constant 0 : index
    %0 = vector.load %arg4[%c0, %c0_0] : memref<32x6xf32, #tpu.memory_space<vmem>>, vector<32x6xf32>
    %c0_1 = arith.constant 0 : index
    %c0_2 = arith.constant 0 : index
    %c0_3 = arith.constant 0 : index
    %1 = vector.load %arg2[%c0_1, %c0_2, %c0_3] : memref<1x6x8xf32, #tpu.memory_space<vmem>>, vector<1x6x8xf32>
    %2 = vector.shape_cast %1 : vector<1x6x8xf32> to vector<6x8xf32>
    %cst = arith.constant dense<0.000000e+00> : vector<32x8xf32>
    %3 = tpu.matmul %0, %2, %cst {dimension_numbers = #tpu.dot_dimension_numbers<[1], [0], [0], [1], [0, 0, 1, 1], [], []>} : vector<32x6xf32>, vector<6x8xf32>, vector<32x8xf32> -> vector<32x8xf32>
    %c0_4 = arith.constant 0 : index
    %c0_5 = arith.constant 0 : index
    %4 = vector.load %arg5[%c0_4, %c0_5] : memref<32x8xf32, #tpu.memory_space<vmem>>, vector<32x8xf32>
    %c0_6 = arith.constant 0 : index
    %c0_7 = arith.constant 0 : index
    %c0_8 = arith.constant 0 : index
    %5 = vector.load %arg3[%c0_6, %c0_7, %c0_8] : memref<1x8x8xf32, #tpu.memory_space<vmem>>, vector<1x8x8xf32>
    %6 = vector.shape_cast %5 : vector<1x8x8xf32> to vector<8x8xf32>
    %cst_9 = arith.constant dense<0.000000e+00> : vector<32x8xf32>
    %7 = tpu.matmul %4, %6, %cst_9 {dimension_numbers = #tpu.dot_dimension_numbers<[1], [0], [0], [1], [0, 0, 1, 1], [], []>} : vector<32x8xf32>, vector<8x8xf32>, vector<32x8xf32> -> vector<32x8xf32>
    %8 = arith.addf %3, %7 : vector<32x8xf32>
    %c0_10 = arith.constant 0 : index
    %c0_11 = arith.constant 0 : index
    %9 = vector.load %arg6[%c0_10, %c0_11] : memref<32x1xf32, #tpu.memory_space<vmem>>, vector<32x1xf32>
    %10 = vector.broadcast %9 : vector<32x1xf32> to vector<32x8xf32>
    %11 = arith.addf %8, %10 : vector<32x8xf32>
    %cst_12 = arith.constant 0.000000e+00 : f32
    %12 = vector.broadcast %cst_12 : f32 to vector<32x8xf32>
    %13 = arith.maximumf %11, %12 : vector<32x8xf32>
    %c0_13 = arith.constant 0 : index
    %c0_14 = arith.constant 0 : index
    %c0_15 = arith.constant 0 : index
    %14 = vector.load %arg7[%c0_13, %c0_14, %c0_15] : memref<1x32x8xf32, #tpu.memory_space<vmem>>, vector<1x32x8xf32>
    %15 = vector.shape_cast %14 : vector<1x32x8xf32> to vector<32x8xf32>
    %16 = vector.shape_cast %13 : vector<32x8xf32> to vector<1x32x8xf32>
    tpu.vector_store %arg7[%c0_13, %c0_14, %c0_15], %16 {strides = array<i32>} : memref<1x32x8xf32, #tpu.memory_space<vmem>>, vector<1x32x8xf32>,
    return
  }
  func.func @transform_0(%arg0: i32, %arg1: i32) -> (i32, i32, i32) {
    %c0_i32 = arith.constant 0 : i32
    %c0_i32_0 = arith.constant 0 : i32
    return %arg0, %c0_i32, %arg1 : i32, i32, i32
  }
  func.func @transform_1(%arg0: i32, %arg1: i32) -> (i32, i32, i32) {
    %c0_i32 = arith.constant 0 : i32
    %c0_i32_0 = arith.constant 0 : i32
    return %arg0, %c0_i32, %arg1 : i32, i32, i32
  }
  func.func @transform_2(%arg0: i32, %arg1: i32) -> (i32, i32) {
    %c0_i32 = arith.constant 0 : i32
    %c0_i32_0 = arith.constant 0 : i32
    %c0_i32_1 = arith.constant 0 : i32
    return %c0_i32, %c0_i32_0 : i32, i32
  }
  func.func @transform_3(%arg0: i32, %arg1: i32) -> (i32, i32) {
    %c0_i32 = arith.constant 0 : i32
    %c0_i32_0 = arith.constant 0 : i32
    %c0_i32_1 = arith.constant 0 : i32
    return %c0_i32, %c0_i32_0 : i32, i32
  }
  func.func @transform_4(%arg0: i32, %arg1: i32) -> (i32, i32) {
    %c0_i32 = arith.constant 0 : i32
    %c0_i32_0 = arith.constant 0 : i32
    %c0_i32_1 = arith.constant 0 : i32
    return %c0_i32, %c0_i32_0 : i32, i32
  }
  func.func @transform_5(%arg0: i32, %arg1: i32) -> (i32, i32, i32) {
    %c0_i32 = arith.constant 0 : i32
    %c0_i32_0 = arith.constant 0 : i32
    return %arg0, %c0_i32, %arg1 : i32, i32, i32
  }
}

</mosaic_0001>

<bundles_post_ra>
// kernel: tpu_custom_call.1
= control target key start
LH: loop header
LB: loop body
LE: loop exit
PB: predicated region body
PF: predicated region fallthrough
CT: control target
= control target key end

     0   :  { %s751_s18 = smov 0   ;;  %s753_s19 = smov 0   ;;  %s839_s0 = inlined_call_operand.vmem [shape: f32[2,6,8], index: 0, kind: input, shape index: {}]   ;;  %s840_s1 = inlined_call_operand.vmem [shape: f32[2,8,8], index: 1, kind: input, shape index: {}]   ;;  %s841_s2 = inlined_call_operand.vmem [shape: f32[32,6], index: 2, kind: input, shape index: {}]   ;;  %s842_s3 = inlined_call_operand.vmem [shape: f32[32,8], index: 3, kind: input, shape index: {}]   ;;  %s843_s4 = inlined_call_operand.vmem [shape: f32[32,1], index: 4, kind: input, shape index: {}]   ;;  %s844_s5 = inlined_call_operand.vmem [shape: f32[2,32,8], index: 5, kind: output, shape index: {}]  }
   0x1   :  { %s755_s20 = smov 0  }
   0x2 LB: > { %s27_s21 = sadd.s32 1, %s714_s19  ;;  %p626_p0 = scmp.ge.s32.totalorder %s718_s20, 1  ;;  %s718_s20 = sphi %s755_s20, %s15_s20   ;;  %s714_s19 = sphi %s753_s19, %s846_s19   ;;  %s710_s18 = sphi %s751_s18, %s845_s18  }
   0x3   : > { %p29_p1 = scmp.ge.s32.totalorder %s27_s21, 2  ;;  %p219_p2 = scmp.lt.s32.totalorder %s718_s20, 3 }
   0x5   : > { %s848_s21 = smov (%p29_p1, %s27_s21), 0  ;;  %p220_p3 = pnand %p626_p0, %p219_p2 }
   0x6   : > { %p259_p4 = scmp.lt.s32.totalorder (!%p220_p3), %s710_s18, 1 }
   0x7   : > { %223 = sbr.rel (%p220_p3) target bundleno = 225 (0xe1), region = 40 }
   0xc   : > { %v286_v0 = vld [vmem:[%s842_s3] sm:$0xff]  ;;  %vm291_vm0 = vcmask 64512   ;;  %vm389_vm1 = vcmask 48128   ;;  %s850_s18 = smov (!%p259_p4, %s710_s18), 1  ;;  %v720_v2 = vmov 0   ;;  %v493_v4 = vld [vmem:[%s843_s4 + $0x10] sm:$0xff] }
   0xd   : > { %v281_v1 = vld [vmem:[%s841_s2] sm:$0xff]  ;;  %655 = vmatprep.mubr.msk.f32.mxu0 %vm291_vm0, %v286_v0  ;;  %694 = vset.pattern.permute.xlu0 %v720_v2  ;;  %s627_s30 = sshll.u32 %s850_s18, 3  ;;  %vm402_vm2 = vcmask 1045504   ;;  %v287_v6 = vld [vmem:[%s842_s3 + $0x8] sm:$0xff]  ;;  %v288_v9 = vld [vmem:[%s842_s3 + $0x10] sm:$0xff]  ;;  %s642_s7 = sshll.u32 %s850_s18, 5 }
   0xe   : > { %663 = vmatprep.mubr.msk.f32.mxu1 %vm389_vm1, %v281_v1  ;;  %695 = vset.pattern.permute.xlu1 %v720_v2  ;;  %v491_v3 = vld [vmem:[%s843_s4] sm:$0xff]  ;;  %s272_s8 = scalar_lea.vmem %s840_s1, %s627_s30  ;;  %s265_s11 = scalar_lea.vmem %s839_s0, %s627_s30  ;;  %v282_v8 = vld [vmem:[%s841_s2 + $0x8] sm:$0xff]  ;;  %v283_v10 = vld [vmem:[%s841_s2 + $0x10] sm:$0xff] }
   0xf   : > { %497 = vperm.xlu0 %694, %v491_v3   ;;  %507 = vperm.xlu1 %695, %v493_v4   ;;  %v290_v5 = vld [vmem:[%s272_s8] sm:$0xff]  ;;  %v492_v11 = vld [vmem:[%s843_s4 + $0x8] sm:$0xff]  ;;  %v494_v12 = vld [vmem:[%s843_s4 + $0x18] sm:$0xff]  ;;  %s280_s10 = scalar_lea.vmem %s844_s5, %s642_s7 }
  0x10   : > { %653 = vmatprep.subr.mxu0 %v290_v5  ;;  %v285_v7 = vld [vmem:[%s265_s11] sm:$0x3f]  ;;  %v289_v13 = vld [vmem:[%s842_s3 + $0x18] sm:$0xff] }
  0x11   : > { %661 = vmatprep.subr.msk.mxu1 %vm402_vm2, %v285_v7  ;;  %654 = vmatpush3.msra.mxu0 %v290_v5  ;;  %v284_v14 = vld [vmem:[%s841_s2 + $0x18] sm:$0xff] }
  0x12   : > { %662 = vmatpush3.msk.msra.mxu1 %vm402_vm2, %v285_v7  ;;  %656 = vmatmul.mubr.msk.f32.vlgmr.msra.gmra.mxu0 %vm291_vm0, %v287_v6 }
  0x13   : > { %664 = vmatmul.mubr.msk.f32.vlgmr.msra.gmra.mxu1 %vm389_vm1, %v282_v8  ;;  %658 = vmatprep.mubr.msk.f32.mxu0 %vm291_vm0, %v288_v9 }
  0x14   : > { %666 = vmatprep.mubr.msk.f32.mxu1 %vm389_vm1, %v283_v10  ;;  %502 = vperm.xlu0 %694, %v492_v11  }
  0x15   : > { %512 = vperm.xlu1 %695, %v494_v12  }
  0x16   : > { %659 = vmatmul.mubr.msk.f32.gmra.mxu0 %vm291_vm0, %v289_v13 }
  0x17   : > { %667 = vmatmul.mubr.msk.f32.gmra.mxu1 %vm389_vm1, %v284_v14 }
  0x8a   : > { %v498_v15 = vpop.permute.xlu0 %497  ;;  %v508_v16 = vpop.permute.xlu1 %507 }
  0x8f   : > { %v503_v19 = vpop.permute.xlu0 %502 }
  0x90   : > { %v513_v31 = vpop.permute.xlu1 %512 }
  0xd2   : > { %v657_v17 = vpop.f32.mrf.mxu0 }
  0xd3   : > { %v665_v18 = vpop.f32.mrf.mxu1 }
  0xd4   : > { %v478_v20 = vadd.f32 %v665_v18, %v657_v17  ;;  %v370_v21 = vpop.f32.mrf.mxu0 }
  0xd5   : > { %v472_v22 = vpop.f32.mrf.mxu1 }
  0xd6   : > { %v516_v23 = vadd.f32 %v503_v19, %v478_v20  ;;  %v473_v24 = vadd.f32 %v472_v22, %v370_v21  ;;  %v660_v25 = vpop.f32.mrf.mxu0 }
  0xd7   : > { %v668_v26 = vpop.f32.mrf.mxu1 }
  0xd8   : > { %v520_v27 = vmax.f32 %v516_v23, 0.0  ;;  %v515_v28 = vadd.f32 %v498_v15, %v473_v24  ;;  %v488_v29 = vadd.f32 %v668_v26, %v660_v25  ;;  %v380_v30 = vpop.f32.mrf.mxu0 }
  0xd9   : > { %v482_v32 = vpop.f32.mrf.mxu1 }
  0xda   : > { %524 = vst.msk [vmem:[%s280_s10 + $0x8] sm:$0xff] %vm291_vm0, %v520_v27  ;;  %v519_v33 = vmax.f32 %v515_v28, 0.0  ;;  %v518_v34 = vadd.f32 %v513_v31, %v488_v29  ;;  %v483_v35 = vadd.f32 %v482_v32, %v380_v30 }
  0xdc   : > { %523 = vst.msk [vmem:[%s280_s10] sm:$0xff] %vm291_vm0, %v519_v33  ;;  %v522_v36 = vmax.f32 %v518_v34, 0.0  ;;  %v517_v37 = vadd.f32 %v508_v16, %v483_v35 }
  0xde   : > { %526 = vst.msk [vmem:[%s280_s10 + $0x18] sm:$0xff] %vm291_vm0, %v522_v36  ;;  %v521_v38 = vmax.f32 %v517_v37, 0.0 }
  0xe0   : > { %525 = vst.msk [vmem:[%s280_s10 + $0x10] sm:$0xff] %vm291_vm0, %v521_v38 }
  0xe1 PF: > { %s15_s20 = sadd.s32 1, %s718_s20   ;;  %s845_s18 = smov %s714_s19 }
  0xe2   : > { %p12_p5 = scmp.ge.s32.totalorder %s15_s20, 4   ;;  %s846_s19 = smov %s848_s21 }
  0xe4   :  { %14 = sbr.rel (!%p12_p5) target bundleno = 2 (0x2), region = 73 }

</bundles_post_ra>
